<compile_context>
chip_gen: v6e
topology: v6e:2x2x1
jax: 0.10.0
libtpu: 0.0.40
codegen_flags: <defaults>
</compile_context>

<pallas_src>
import functools
import math

import jax
import jax.numpy as jnp
from jax.experimental import pallas as pl
from jax.experimental.pallas import tpu as pltpu

EPS = 1e-5
LANE = 128
VMEM_LIMIT = 32 * 1024 * 1024   # tiny working set; explicit per review


def _round_up(x, m):
    return ((x + m - 1) // m) * m


def _pad2d(x, rows, cols):
    """Zero-pad a 2D array up to (rows, cols) (wrapper-side, done once)."""
    out = jnp.zeros((rows, cols), x.dtype)
    return out.at[: x.shape[0], : x.shape[1]].set(x)


def _softmax_lastdim(x):
    m = jnp.max(x, axis=-1, keepdims=True)
    e = jnp.exp(x - m)
    return e / jnp.sum(e, axis=-1, keepdims=True)   # exact: att is user-visible


def _lin_relu_bn(h, w_ref, b_ref, g_ref, be_ref):
    """Linear -> ReLU -> BatchNorm1d (training-mode batch statistics)."""
    z = jnp.maximum(
        jnp.dot(h.astype(jnp.bfloat16), w_ref[...],
                preferred_element_type=jnp.float32) + b_ref[...], 0.0)
    mean = jnp.mean(z, axis=0, keepdims=True)
    var = jnp.mean((z - mean) ** 2, axis=0, keepdims=True)
    return (z - mean) * jax.lax.rsqrt(var + EPS) * g_ref[...] + be_ref[...]


# -----------------------------------------------------------------------------
# K1: protein branch (gated blocks + BatchNorm). Ungridded: BN statistics
#     couple across the whole batch, so it cannot be split over a batch grid.
# -----------------------------------------------------------------------------
def _protein_kernel(n_blocks, *refs):
    it = iter(refs)
    ve_ref = next(it)                                    # (B, L, C_pad) f32
    blocks = [(next(it), next(it), next(it), next(it))   # (Wg|Ws, bg|bs, g, be)
              for _ in range(n_blocks)]
    vp_ref = next(it)                                    # (B, L, E_pad) out

    ve = ve_ref[...]
    B, L, C = ve.shape
    x = ve.reshape(B * L, C)
    # TODO(synk): Multi_order_gated definition not provided; approximated by a
    # pointwise gated projection y = (xWg+bg) * sigmoid(xWs+bs).
    for (wcat_ref, bcat_ref, g_ref, be_ref) in blocks:
        z = jnp.dot(x.astype(jnp.bfloat16), wcat_ref[...],
                    preferred_element_type=jnp.float32) + bcat_ref[...]
        cout = z.shape[-1] // 2
        gate, sig = z[:, :cout], z[:, cout:]
        hp = jnp.maximum(gate * jax.nn.sigmoid(sig), 0.0)
        mean = jnp.mean(hp, axis=0, keepdims=True)
        var = jnp.mean((hp - mean) ** 2, axis=0, keepdims=True)
        x = (hp - mean) * jax.lax.rsqrt(var + EPS) * g_ref[...] + be_ref[...]
    vp_ref[...] = x.reshape(B, L, -1)


# -----------------------------------------------------------------------------
# K2: per-batch drug GCN + symmetric cross-attention. Gridded over batch.
# -----------------------------------------------------------------------------
def _drug_attn_kernel(n_gcn, e_d_real, emit_att, *refs):
    it = iter(refs)
    nf_ref = next(it)      # (1, N, Fin)
    adj_ref = next(it)     # (1, N, N)
    vp_ref = next(it)      # (1, L, E_pad)
    winit_ref = next(it)   # (Fin, E_pad) bf16
    gcn = [(next(it), next(it)) for _ in range(n_gcn)]   # (W bf16, b f32)
    od_ref = next(it)      # (1, N, E_pad)
    op_ref = next(it)      # (1, L, E_pad)
    of_ref = next(it)      # (1, 1, 2*E_pad)
    oatt_ref = next(it) if emit_att else None            # (1, N, L) eval only

    nf = nf_ref[0]
    adj = adj_ref[0].astype(jnp.bfloat16)

    # --- drug branch: init transform + GCN message passing ---
    # TODO(synk): dgllife GCN residual/per-layer norm details not provided.
    h = jnp.dot(nf.astype(jnp.bfloat16), winit_ref[...],
                preferred_element_type=jnp.float32)                   # (N, E_pad)
    for (w_ref, b_ref) in gcn:
        msg = jnp.dot(adj, h.astype(jnp.bfloat16),
                      preferred_element_type=jnp.float32)
        z = jnp.dot(msg.astype(jnp.bfloat16), w_ref[...],
                    preferred_element_type=jnp.float32) + b_ref[...]
        h = jnp.maximum(z, 0.0)
    v_d = h                                                           # (N, E_pad)
    v_p = vp_ref[0]                                                   # (L, E_pad)

    # --- symmetric cross-attention (Fea_extractor approximation) ---
    scale = 1.0 / math.sqrt(e_d_real)
    vdb = v_d.astype(jnp.bfloat16)
    vpb = v_p.astype(jnp.bfloat16)

    s_dp = jnp.einsum("qd,kd->qk", vdb, vpb,
                      preferred_element_type=jnp.float32) * scale     # (N, L)
    a_dp = _softmax_lastdim(s_dp)
    d_ctx = jnp.dot(a_dp.astype(jnp.bfloat16), vpb,
                    preferred_element_type=jnp.float32)               # (N, E_pad)

    # protein->drug scores via a second MXU matmul (no XLU transpose of s_dp).
    # TODO(synk): on v5e (3 XLUs, weaker MXU) transposing s_dp may be cheaper.
    s_pd = jnp.einsum("kd,qd->kq", vpb, vdb,
                      preferred_element_type=jnp.float32) * scale     # (L, N)
    a_pd = _softmax_lastdim(s_pd)
    p_ctx = jnp.dot(a_pd.astype(jnp.bfloat16), vdb,
                    preferred_element_type=jnp.float32)               # (L, E_pad)

    d_mean = jnp.mean(d_ctx, axis=0, keepdims=True)                   # (1, E_pad)
    p_mean = jnp.mean(p_ctx, axis=0, keepdims=True)                   # (1, E_pad)

    od_ref[0] = d_ctx
    op_ref[0] = p_ctx
    of_ref[0] = jnp.concatenate([d_mean, p_mean], axis=-1)
    if emit_att:
        oatt_ref[0] = a_dp


# -----------------------------------------------------------------------------
# K3: MLP decoder. Ungridded: BatchNorm statistics couple across the batch.
# -----------------------------------------------------------------------------
def _mlp_kernel(f_ref, w1, b1, g1, be1, w2, b2, g2, be2,
                w3, b3, g3, be3, w4, b4, out_ref):
    h = _lin_relu_bn(f_ref[...], w1, b1, g1, be1)
    h = _lin_relu_bn(h, w2, b2, g2, be2)
    h = _lin_relu_bn(h, w3, b3, g3, be3)
    out_ref[...] = jnp.dot(h.astype(jnp.bfloat16), w4[...],
                           preferred_element_type=jnp.float32) + b4[...]


# -----------------------------------------------------------------------------
# Wrapper-side parameter preparation: lane padding, Wg|Ws packing, bf16 cast.
# Done ONCE, outside the kernels.
# -----------------------------------------------------------------------------
def prepare_params(params):
    drug, prot, mlp = params["drug"], params["prot"], params["mlp"]

    e_d = drug["gcn"][-1][0].shape[-1]
    e_p = prot["blocks"][-1][4].shape[-1]
    assert e_d == e_p, "cross-attention requires last GCN dim == last protein filter"
    assert mlp["w1"].shape[0] == e_p + e_d, "DECODER.IN_DIM must equal e_p + e_d"
    feat_pad = _round_up(max(e_d, e_p), LANE)

    # Drug branch.
    fin = drug["w_init"].shape[0]
    w_init = _pad2d(drug["w_init"], fin,
                    _round_up(drug["w_init"].shape[1], LANE)).astype(jnp.bfloat16)
    gcn = []
    for (w, b) in drug["gcn"]:
        rp = _round_up(w.shape[0], LANE)
        cp = _round_up(w.shape[1], LANE)
        gcn.append((_pad2d(w, rp, cp).astype(jnp.bfloat16), _pad2d(b, 1, cp)))

    # Protein branch: pad Wg / Ws separately, then pack side by side so the
    # in-kernel lane split at cout_pad stays aligned.
    emb = _pad2d(prot["embedding"], prot["embedding"].shape[0],
                 _round_up(prot["embedding"].shape[1], LANE))
    prot_blocks = []
    for (wg, bg, ws, bs, g, be) in prot["blocks"]:
        rp = _round_up(wg.shape[0], LANE)
        cp = _round_up(wg.shape[1], LANE)
        wcat = jnp.concatenate([_pad2d(wg, rp, cp), _pad2d(ws, rp, cp)],
                               axis=-1).astype(jnp.bfloat16)
        bcat = jnp.concatenate([_pad2d(bg, 1, cp), _pad2d(bs, 1, cp)], axis=-1)
        prot_blocks.append((wcat, bcat, _pad2d(g, 1, cp), _pad2d(be, 1, cp)))

    # MLP decoder. The fused f is laid out padded as [d_mean | p_mean] of width
    # 2*feat_pad, so w1's rows are remapped accordingly.
    hid = mlp["w1"].shape[1]
    hid_pad = _round_up(hid, LANE)
    out_dim = mlp["w3"].shape[1]
    out_pad = _round_up(out_dim, LANE)
    binary = mlp["w4"].shape[1]
    bin_pad = _round_up(binary, LANE)

    w1p = jnp.zeros((2 * feat_pad, hid_pad), jnp.float32)
    w1p = w1p.at[:e_p, :hid].set(mlp["w1"][:e_p])
    w1p = w1p.at[feat_pad:feat_pad + e_d, :hid].set(mlp["w1"][e_p:])
    mlp_flat = (
        w1p.astype(jnp.bfloat16), _pad2d(mlp["b1"], 1, hid_pad),
        _pad2d(mlp["g1"], 1, hid_pad), _pad2d(mlp["be1"], 1, hid_pad),
        _pad2d(mlp["w2"], hid_pad, hid_pad).astype(jnp.bfloat16),
        _pad2d(mlp["b2"], 1, hid_pad),
        _pad2d(mlp["g2"], 1, hid_pad), _pad2d(mlp["be2"], 1, hid_pad),
        _pad2d(mlp["w3"], hid_pad, out_pad).astype(jnp.bfloat16),
        _pad2d(mlp["b3"], 1, out_pad),
        _pad2d(mlp["g3"], 1, out_pad), _pad2d(mlp["be3"], 1, out_pad),
        _pad2d(mlp["w4"], out_pad, bin_pad).astype(jnp.bfloat16),
        _pad2d(mlp["b4"], 1, bin_pad),
    )

    return dict(w_init=w_init, gcn=gcn, emb=emb, prot_blocks=prot_blocks,
                mlp=mlp_flat,
                dims=dict(e_d=e_d, e_p=e_p, feat_pad=feat_pad,
                          binary=binary, bin_pad=bin_pad))


# -----------------------------------------------------------------------------
# Forward pass.
# -----------------------------------------------------------------------------
def mgmadti_forward(prep, node_feats, adj_norm, prot_tokens, mode="train"):
    B, N, Fin = node_feats.shape
    L = prot_tokens.shape[1]
    dims = prep["dims"]
    e_d, e_p = dims["e_d"], dims["e_p"]
    feat_pad = dims["feat_pad"]
    binary = dims["binary"]
    bin_pad = dims["bin_pad"]
    # TODO(synk): general N / L would need sublane padding + masked softmaxes.
    assert N % 8 == 0 and L % 8 == 0

    # Tiny embedding gather kept in XLA; all dense compute runs in Pallas.
    v_emb = prep["emb"][prot_tokens].astype(jnp.float32)          # (B, L, C_pad)

    # ---- K1: protein branch (full-batch BatchNorm stats -> ungridded) ----
    prot_flat = [t for blk in prep["prot_blocks"] for t in blk]
    v_p = pl.pallas_call(
        functools.partial(_protein_kernel, len(prep["prot_blocks"])),
        out_shape=jax.ShapeDtypeStruct((B, L, feat_pad), jnp.float32),
        compiler_params=pltpu.CompilerParams(vmem_limit_bytes=VMEM_LIMIT),
    )(v_emb, *prot_flat)

    # ---- K2: drug GCN + cross attention, gridded over batch ("parallel") ----
    gcn_flat = [t for wb in prep["gcn"] for t in wb]
    n_gcn = len(prep["gcn"])
    emit_att = (mode != "train")

    def rep(shape):   # replicated (weight) block: same full-array block each step
        return pl.BlockSpec(shape, lambda b: (0, 0))

    in_specs = [
        pl.BlockSpec((1, N, Fin), lambda b: (b, 0, 0)),
        pl.BlockSpec((1, N, N), lambda b: (b, 0, 0)),
        pl.BlockSpec((1, L, feat_pad), lambda b: (b, 0, 0)),
        rep(prep["w_init"].shape),
    ]
    for (w, bb) in prep["gcn"]:
        in_specs += [rep(w.shape), rep(bb.shape)]

    out_shapes = [
        jax.ShapeDtypeStruct((B, N, feat_pad), jnp.float32),
        jax.ShapeDtypeStruct((B, L, feat_pad), jnp.float32),
        jax.ShapeDtypeStruct((B, 1, 2 * feat_pad), jnp.float32),
    ]
    out_specs = [
        pl.BlockSpec((1, N, feat_pad), lambda b: (b, 0, 0)),
        pl.BlockSpec((1, L, feat_pad), lambda b: (b, 0, 0)),
        pl.BlockSpec((1, 1, 2 * feat_pad), lambda b: (b, 0, 0)),
    ]
    if emit_att:
        out_shapes.append(jax.ShapeDtypeStruct((B, N, L), jnp.float32))
        out_specs.append(pl.BlockSpec((1, N, L), lambda b: (b, 0, 0)))

    outs = pl.pallas_call(
        functools.partial(_drug_attn_kernel, n_gcn, e_d, emit_att),
        grid=(B,),
        in_specs=in_specs,
        out_specs=tuple(out_specs),
        out_shape=tuple(out_shapes),
        compiler_params=pltpu.CompilerParams(
            dimension_semantics=("parallel",),
            vmem_limit_bytes=VMEM_LIMIT),
    )(node_feats, adj_norm, v_p, prep["w_init"], *gcn_flat)

    if emit_att:
        od, op, of, oatt = outs
    else:
        od, op, of = outs
        oatt = None
    f_pad = of.reshape(B, 2 * feat_pad)

    # ---- K3: MLP decoder (full-batch BatchNorm stats -> ungridded) ----
    score_pad = pl.pallas_call(
        _mlp_kernel,
        out_shape=jax.ShapeDtypeStruct((B, bin_pad), jnp.float32),
        compiler_params=pltpu.CompilerParams(vmem_limit_bytes=VMEM_LIMIT),
    )(f_pad, *prep["mlp"])

    # ---- un-pad (layout plumbing only, in the wrapper) ----
    v_d2 = od[:, :, :e_p]
    v_p2 = op[:, :, :e_d]
    f = jnp.concatenate(
        [f_pad[:, :e_p], f_pad[:, feat_pad:feat_pad + e_d]], axis=-1)
    score = score_pad[:, :binary]

    if mode == "train":
        return v_d2, v_p2, f, score
    return v_d2, v_p2, score, oatt


# -----------------------------------------------------------------------------
# Parameter initialization (deterministic, synthetic, real / unpadded shapes).
# -----------------------------------------------------------------------------
def init_params(key, cfg):
    keys = iter(jax.random.split(key, 64))

    def w(shape, scale=0.1):
        return (scale * jax.random.normal(next(keys), shape)).astype(jnp.float32)

    d, p, m = cfg["DRUG"], cfg["PROTEIN"], cfg["DECODER"]

    # MolecularGCN: init_transform (no bias), last output unit zeroed (padding).
    w_init = w((d["NODE_IN_FEATS"], d["NODE_IN_EMBEDDING"]))
    w_init = w_init.at[:, -1].set(0.0)
    gcn = []
    prev = d["NODE_IN_EMBEDDING"]
    for h in d["HIDDEN_LAYERS"]:
        gcn.append((w((prev, h)), w((1, h))))
        prev = h

    # ProteinModule: embedding (padding_idx=0 zeroed) + 3 gated blocks with BN.
    emb = w((26, p["EMBEDDING_DIM"]))
    emb = emb.at[0].set(0.0)
    blocks = []
    cin = p["EMBEDDING_DIM"]
    for cout in p["NUM_FILTERS"]:
        blocks.append((w((cin, cout)), w((1, cout)),
                       w((cin, cout)), w((1, cout)),
                       jnp.ones((1, cout), jnp.float32),
                       jnp.zeros((1, cout), jnp.float32)))
        cin = cout

    # MLPDecoder.
    mlp = dict(
        w1=w((m["IN_DIM"], m["HIDDEN_DIM"])), b1=w((1, m["HIDDEN_DIM"])),
        g1=jnp.ones((1, m["HIDDEN_DIM"]), jnp.float32),
        be1=jnp.zeros((1, m["HIDDEN_DIM"]), jnp.float32),
        w2=w((m["HIDDEN_DIM"], m["HIDDEN_DIM"])), b2=w((1, m["HIDDEN_DIM"])),
        g2=jnp.ones((1, m["HIDDEN_DIM"]), jnp.float32),
        be2=jnp.zeros((1, m["HIDDEN_DIM"]), jnp.float32),
        w3=w((m["HIDDEN_DIM"], m["OUT_DIM"])), b3=w((1, m["OUT_DIM"])),
        g3=jnp.ones((1, m["OUT_DIM"]), jnp.float32),
        be3=jnp.zeros((1, m["OUT_DIM"]), jnp.float32),
        w4=w((m["OUT_DIM"], m["BINARY"])), b4=w((1, m["BINARY"])),
    )
    return dict(drug=dict(w_init=w_init, gcn=gcn),
                prot=dict(embedding=emb, blocks=blocks),
                mlp=mlp)


if __name__ == "__main__":
    config = {
        "DRUG": {"NODE_IN_FEATS": 16, "NODE_IN_EMBEDDING": 32,
                 "HIDDEN_LAYERS": [32, 32, 32], "PADDING": True},
        "PROTEIN": {"EMBEDDING_DIM": 32, "NUM_FILTERS": [32, 32, 32],
                    "NUM_HEAD": 2, "PADDING": True},
        "CROSSINTENTION": {"NUM_HEAD": 2, "EMBEDDING_DIM": 32, "LAYER": 1},
        "DECODER": {"IN_DIM": 64, "HIDDEN_DIM": 64, "OUT_DIM": 32, "BINARY": 1},
    }

    B, N_nodes, L_prot = 2, 8, 16
    key = jax.random.PRNGKey(0)
    k_feat, k_adj, k_tok, k_par = jax.random.split(key, 4)

    # Drug graph: random node features + random symmetric adjacency w/ self loops.
    node_feats = jax.random.normal(
        k_feat, (B, N_nodes, config["DRUG"]["NODE_IN_FEATS"]), jnp.float32)
    a = (jax.random.uniform(k_adj, (B, N_nodes, N_nodes)) > 0.5).astype(jnp.float32)
    adj = jnp.maximum(a, jnp.swapaxes(a, 1, 2))
    adj = jnp.maximum(adj, jnp.eye(N_nodes)[None])
    deg = adj.sum(-1)
    d_inv = 1.0 / jnp.sqrt(deg)
    adj_norm = d_inv[:, :, None] * adj * d_inv[:, None, :]   # symmetric normalization

    # Protein token sequence.
    prot_tokens = jax.random.randint(k_tok, (B, L_prot), 0, 26, dtype=jnp.int32)

    params = init_params(k_par, config)
    prep = prepare_params(params)   # padding / packing / bf16 cast, done once

    out_train = mgmadti_forward(prep, node_feats, adj_norm, prot_tokens, mode="train")
    jax.block_until_ready(out_train)
    out_eval = mgmadti_forward(prep, node_feats, adj_norm, prot_tokens, mode="eval")
    jax.block_until_ready(out_eval)
    print("KERNEL_OK")
</pallas_src>

<mosaic_0001>
module attributes {stable_mosaic.version = 11 : i64} {
  func.func @_protein_kernel(%arg0: memref<2x16x128xf32, #tpu.memory_space<vmem>>, %arg1: memref<128x256xbf16, #tpu.memory_space<vmem>>, %arg2: memref<1x256xf32, #tpu.memory_space<vmem>>, %arg3: memref<1x128xf32, #tpu.memory_space<vmem>>, %arg4: memref<1x128xf32, #tpu.memory_space<vmem>>, %arg5: memref<128x256xbf16, #tpu.memory_space<vmem>>, %arg6: memref<1x256xf32, #tpu.memory_space<vmem>>, %arg7: memref<1x128xf32, #tpu.memory_space<vmem>>, %arg8: memref<1x128xf32, #tpu.memory_space<vmem>>, %arg9: memref<128x256xbf16, #tpu.memory_space<vmem>>, %arg10: memref<1x256xf32, #tpu.memory_space<vmem>>, %arg11: memref<1x128xf32, #tpu.memory_space<vmem>>, %arg12: memref<1x128xf32, #tpu.memory_space<vmem>>, %arg13: memref<2x16x128xf32, #tpu.memory_space<vmem>>) attributes {dimension_semantics = [], scalar_prefetch = 0 : i64, scratch_operands = 0 : i64, tpu.core_type = #tpu.core_type<tc>} {
    %c0 = arith.constant 0 : index
    %c0_0 = arith.constant 0 : index
    %c0_1 = arith.constant 0 : index
    %0 = vector.load %arg0[%c0, %c0_0, %c0_1] : memref<2x16x128xf32, #tpu.memory_space<vmem>>, vector<2x16x128xf32>
    %1 = vector.shape_cast %0 : vector<2x16x128xf32> to vector<32x128xf32>
    %2 = arith.truncf %1 : vector<32x128xf32> to vector<32x128xbf16>
    %c0_2 = arith.constant 0 : index
    %c0_3 = arith.constant 0 : index
    %3 = vector.load %arg1[%c0_2, %c0_3] : memref<128x256xbf16, #tpu.memory_space<vmem>>, vector<128x256xbf16>
    %cst = arith.constant dense<0.000000e+00> : vector<32x256xf32>
    %4 = tpu.matmul %2, %3, %cst {dimension_numbers = #tpu.dot_dimension_numbers<[1], [0], [0], [1], [0, 0, 1, 1], [], []>} : vector<32x128xbf16>, vector<128x256xbf16>, vector<32x256xf32> -> vector<32x256xf32>
    %c0_4 = arith.constant 0 : index
    %c0_5 = arith.constant 0 : index
    %5 = vector.load %arg2[%c0_4, %c0_5] : memref<1x256xf32, #tpu.memory_space<vmem>>, vector<1x256xf32>
    %6 = vector.broadcast %5 : vector<1x256xf32> to vector<32x256xf32>
    %7 = arith.addf %4, %6 : vector<32x256xf32>
    %8 = vector.extract_strided_slice %7 {offsets = [0, 0], sizes = [32, 128], strides = [1, 1]} : vector<32x256xf32> to vector<32x128xf32>
    %9 = vector.extract_strided_slice %7 {offsets = [0, 128], sizes = [32, 128], strides = [1, 1]} : vector<32x256xf32> to vector<32x128xf32>
    %10 = arith.negf %9 : vector<32x128xf32>
    %11 = math.exp %10 : vector<32x128xf32>
    %cst_6 = arith.constant 1.000000e+00 : f32
    %12 = vector.broadcast %cst_6 : f32 to vector<32x128xf32>
    %13 = arith.addf %12, %11 : vector<32x128xf32>
    %14 = arith.divf %12, %13 : vector<32x128xf32>
    %15 = arith.mulf %8, %14 : vector<32x128xf32>
    %cst_7 = arith.constant 0.000000e+00 : f32
    %16 = vector.broadcast %cst_7 : f32 to vector<32x128xf32>
    %17 = arith.maximumf %15, %16 : vector<32x128xf32>
    %cst_8 = arith.constant dense<0.000000e+00> : vector<128xf32>
    %18 = vector.multi_reduction <add>, %17, %cst_8 [0] : vector<32x128xf32> to vector<128xf32>
    %19 = vector.shape_cast %18 : vector<128xf32> to vector<1x128xf32>
    %cst_9 = arith.constant 3.200000e+01 : f32
    %20 = vector.broadcast %cst_9 : f32 to vector<1x128xf32>
    %21 = arith.divf %19, %20 : vector<1x128xf32>
    %22 = vector.broadcast %21 : vector<1x128xf32> to vector<32x128xf32>
    %23 = arith.subf %17, %22 : vector<32x128xf32>
    %24 = arith.mulf %23, %23 : vector<32x128xf32>
    %cst_10 = arith.constant dense<0.000000e+00> : vector<128xf32>
    %25 = vector.multi_reduction <add>, %24, %cst_10 [0] : vector<32x128xf32> to vector<128xf32>
    %26 = vector.shape_cast %25 : vector<128xf32> to vector<1x128xf32>
    %cst_11 = arith.constant 3.200000e+01 : f32
    %27 = vector.broadcast %cst_11 : f32 to vector<1x128xf32>
    %28 = arith.divf %26, %27 : vector<1x128xf32>
    %29 = vector.broadcast %21 : vector<1x128xf32> to vector<32x128xf32>
    %30 = arith.subf %17, %29 : vector<32x128xf32>
    %cst_12 = arith.constant 9.99999974E-6 : f32
    %31 = vector.broadcast %cst_12 : f32 to vector<1x128xf32>
    %32 = arith.addf %28, %31 : vector<1x128xf32>
    %33 = math.rsqrt %32 : vector<1x128xf32>
    %34 = vector.broadcast %33 : vector<1x128xf32> to vector<32x128xf32>
    %35 = arith.mulf %30, %34 : vector<32x128xf32>
    %c0_13 = arith.constant 0 : index
    %c0_14 = arith.constant 0 : index
    %36 = vector.load %arg3[%c0_13, %c0_14] : memref<1x128xf32, #tpu.memory_space<vmem>>, vector<1x128xf32>
    %37 = vector.broadcast %36 : vector<1x128xf32> to vector<32x128xf32>
    %38 = arith.mulf %35, %37 : vector<32x128xf32>
    %c0_15 = arith.constant 0 : index
    %c0_16 = arith.constant 0 : index
    %39 = vector.load %arg4[%c0_15, %c0_16] : memref<1x128xf32, #tpu.memory_space<vmem>>, vector<1x128xf32>
    %40 = vector.broadcast %39 : vector<1x128xf32> to vector<32x128xf32>
    %41 = arith.addf %38, %40 : vector<32x128xf32>
    %42 = arith.truncf %41 : vector<32x128xf32> to vector<32x128xbf16>
    %c0_17 = arith.constant 0 : index
    %c0_18 = arith.constant 0 : index
    %43 = vector.load %arg5[%c0_17, %c0_18] : memref<128x256xbf16, #tpu.memory_space<vmem>>, vector<128x256xbf16>
    %cst_19 = arith.constant dense<0.000000e+00> : vector<32x256xf32>
    %44 = tpu.matmul %42, %43, %cst_19 {dimension_numbers = #tpu.dot_dimension_numbers<[1], [0], [0], [1], [0, 0, 1, 1], [], []>} : vector<32x128xbf16>, vector<128x256xbf16>, vector<32x256xf32> -> vector<32x256xf32>
    %c0_20 = arith.constant 0 : index
    %c0_21 = arith.constant 0 : index
    %45 = vector.load %arg6[%c0_20, %c0_21] : memref<1x256xf32, #tpu.memory_space<vmem>>, vector<1x256xf32>
    %46 = vector.broadcast %45 : vector<1x256xf32> to vector<32x256xf32>
    %47 = arith.addf %44, %46 : vector<32x256xf32>
    %48 = vector.extract_strided_slice %47 {offsets = [0, 0], sizes = [32, 128], strides = [1, 1]} : vector<32x256xf32> to vector<32x128xf32>
    %49 = vector.extract_strided_slice %47 {offsets = [0, 128], sizes = [32, 128], strides = [1, 1]} : vector<32x256xf32> to vector<32x128xf32>
    %50 = arith.negf %49 : vector<32x128xf32>
    %51 = math.exp %50 : vector<32x128xf32>
    %cst_22 = arith.constant 1.000000e+00 : f32
    %52 = vector.broadcast %cst_22 : f32 to vector<32x128xf32>
    %53 = arith.addf %52, %51 : vector<32x128xf32>
    %54 = arith.divf %52, %53 : vector<32x128xf32>
    %55 = arith.mulf %48, %54 : vector<32x128xf32>
    %cst_23 = arith.constant 0.000000e+00 : f32
    %56 = vector.broadcast %cst_23 : f32 to vector<32x128xf32>
    %57 = arith.maximumf %55, %56 : vector<32x128xf32>
    %cst_24 = arith.constant dense<0.000000e+00> : vector<128xf32>
    %58 = vector.multi_reduction <add>, %57, %cst_24 [0] : vector<32x128xf32> to vector<128xf32>
    %59 = vector.shape_cast %58 : vector<128xf32> to vector<1x128xf32>
    %cst_25 = arith.constant 3.200000e+01 : f32
    %60 = vector.broadcast %cst_25 : f32 to vector<1x128xf32>
    %61 = arith.divf %59, %60 : vector<1x128xf32>
    %62 = vector.broadcast %61 : vector<1x128xf32> to vector<32x128xf32>
    %63 = arith.subf %57, %62 : vector<32x128xf32>
    %64 = arith.mulf %63, %63 : vector<32x128xf32>
    %cst_26 = arith.constant dense<0.000000e+00> : vector<128xf32>
    %65 = vector.multi_reduction <add>, %64, %cst_26 [0] : vector<32x128xf32> to vector<128xf32>
    %66 = vector.shape_cast %65 : vector<128xf32> to vector<1x128xf32>
    %cst_27 = arith.constant 3.200000e+01 : f32
    %67 = vector.broadcast %cst_27 : f32 to vector<1x128xf32>
    %68 = arith.divf %66, %67 : vector<1x128xf32>
    %69 = vector.broadcast %61 : vector<1x128xf32> to vector<32x128xf32>
    %70 = arith.subf %57, %69 : vector<32x128xf32>
    %cst_28 = arith.constant 9.99999974E-6 : f32
    %71 = vector.broadcast %cst_28 : f32 to vector<1x128xf32>
    %72 = arith.addf %68, %71 : vector<1x128xf32>
    %73 = math.rsqrt %72 : vector<1x128xf32>
    %74 = vector.broadcast %73 : vector<1x128xf32> to vector<32x128xf32>
    %75 = arith.mulf %70, %74 : vector<32x128xf32>
    %c0_29 = arith.constant 0 : index
    %c0_30 = arith.constant 0 : index
    %76 = vector.load %arg7[%c0_29, %c0_30] : memref<1x128xf32, #tpu.memory_space<vmem>>, vector<1x128xf32>
    %77 = vector.broadcast %76 : vector<1x128xf32> to vector<32x128xf32>
    %78 = arith.mulf %75, %77 : vector<32x128xf32>
    %c0_31 = arith.constant 0 : index
    %c0_32 = arith.constant 0 : index
    %79 = vector.load %arg8[%c0_31, %c0_32] : memref<1x128xf32, #tpu.memory_space<vmem>>, vector<1x128xf32>
    %80 = vector.broadcast %79 : vector<1x128xf32> to vector<32x128xf32>
    %81 = arith.addf %78, %80 : vector<32x128xf32>
    %82 = arith.truncf %81 : vector<32x128xf32> to vector<32x128xbf16>
    %c0_33 = arith.constant 0 : index
    %c0_34 = arith.constant 0 : index
    %83 = vector.load %arg9[%c0_33, %c0_34] : memref<128x256xbf16, #tpu.memory_space<vmem>>, vector<128x256xbf16>
    %cst_35 = arith.constant dense<0.000000e+00> : vector<32x256xf32>
    %84 = tpu.matmul %82, %83, %cst_35 {dimension_numbers = #tpu.dot_dimension_numbers<[1], [0], [0], [1], [0, 0, 1, 1], [], []>} : vector<32x128xbf16>, vector<128x256xbf16>, vector<32x256xf32> -> vector<32x256xf32>
    %c0_36 = arith.constant 0 : index
    %c0_37 = arith.constant 0 : index
    %85 = vector.load %arg10[%c0_36, %c0_37] : memref<1x256xf32, #tpu.memory_space<vmem>>, vector<1x256xf32>
    %86 = vector.broadcast %85 : vector<1x256xf32> to vector<32x256xf32>
    %87 = arith.addf %84, %86 : vector<32x256xf32>
    %88 = vector.extract_strided_slice %87 {offsets = [0, 0], sizes = [32, 128], strides = [1, 1]} : vector<32x256xf32> to vector<32x128xf32>
    %89 = vector.extract_strided_slice %87 {offsets = [0, 128], sizes = [32, 128], strides = [1, 1]} : vector<32x256xf32> to vector<32x128xf32>
    %90 = arith.negf %89 : vector<32x128xf32>
    %91 = math.exp %90 : vector<32x128xf32>
    %cst_38 = arith.constant 1.000000e+00 : f32
    %92 = vector.broadcast %cst_38 : f32 to vector<32x128xf32>
    %93 = arith.addf %92, %91 : vector<32x128xf32>
    %94 = arith.divf %92, %93 : vector<32x128xf32>
    %95 = arith.mulf %88, %94 : vector<32x128xf32>
    %cst_39 = arith.constant 0.000000e+00 : f32
    %96 = vector.broadcast %cst_39 : f32 to vector<32x128xf32>
    %97 = arith.maximumf %95, %96 : vector<32x128xf32>
    %cst_40 = arith.constant dense<0.000000e+00> : vector<128xf32>
    %98 = vector.multi_reduction <add>, %97, %cst_40 [0] : vector<32x128xf32> to vector<128xf32>
    %99 = vector.shape_cast %98 : vector<128xf32> to vector<1x128xf32>
    %cst_41 = arith.constant 3.200000e+01 : f32
    %100 = vector.broadcast %cst_41 : f32 to vector<1x128xf32>
    %101 = arith.divf %99, %100 : vector<1x128xf32>
    %102 = vector.broadcast %101 : vector<1x128xf32> to vector<32x128xf32>
    %103 = arith.subf %97, %102 : vector<32x128xf32>
    %104 = arith.mulf %103, %103 : vector<32x128xf32>
    %cst_42 = arith.constant dense<0.000000e+00> : vector<128xf32>
    %105 = vector.multi_reduction <add>, %104, %cst_42 [0] : vector<32x128xf32> to vector<128xf32>
    %106 = vector.shape_cast %105 : vector<128xf32> to vector<1x128xf32>
    %cst_43 = arith.constant 3.200000e+01 : f32
    %107 = vector.broadcast %cst_43 : f32 to vector<1x128xf32>
    %108 = arith.divf %106, %107 : vector<1x128xf32>
    %109 = vector.broadcast %101 : vector<1x128xf32> to vector<32x128xf32>
    %110 = arith.subf %97, %109 : vector<32x128xf32>
    %cst_44 = arith.constant 9.99999974E-6 : f32
    %111 = vector.broadcast %cst_44 : f32 to vector<1x128xf32>
    %112 = arith.addf %108, %111 : vector<1x128xf32>
    %113 = math.rsqrt %112 : vector<1x128xf32>
    %114 = vector.broadcast %113 : vector<1x128xf32> to vector<32x128xf32>
    %115 = arith.mulf %110, %114 : vector<32x128xf32>
    %c0_45 = arith.constant 0 : index
    %c0_46 = arith.constant 0 : index
    %116 = vector.load %arg11[%c0_45, %c0_46] : memref<1x128xf32, #tpu.memory_space<vmem>>, vector<1x128xf32>
    %117 = vector.broadcast %116 : vector<1x128xf32> to vector<32x128xf32>
    %118 = arith.mulf %115, %117 : vector<32x128xf32>
    %c0_47 = arith.constant 0 : index
    %c0_48 = arith.constant 0 : index
    %119 = vector.load %arg12[%c0_47, %c0_48] : memref<1x128xf32, #tpu.memory_space<vmem>>, vector<1x128xf32>
    %120 = vector.broadcast %119 : vector<1x128xf32> to vector<32x128xf32>
    %121 = arith.addf %118, %120 : vector<32x128xf32>
    %122 = vector.shape_cast %121 : vector<32x128xf32> to vector<2x16x128xf32>
    %c0_49 = arith.constant 0 : index
    %c0_50 = arith.constant 0 : index
    %c0_51 = arith.constant 0 : index
    %123 = vector.load %arg13[%c0_49, %c0_50, %c0_51] : memref<2x16x128xf32, #tpu.memory_space<vmem>>, vector<2x16x128xf32>
    tpu.vector_store %arg13[%c0_49, %c0_50, %c0_51], %122 {strides = array<i32>} : memref<2x16x128xf32, #tpu.memory_space<vmem>>, vector<2x16x128xf32>,
    return
  }
}

</mosaic_0001>

<bundles_post_ra>
// kernel: tpu_custom_call.1
= control target key start
LH: loop header
LB: loop body
LE: loop exit
PB: predicated region body
PF: predicated region fallthrough
CT: control target
= control target key end

     0   :  { %18 = vsyncpa [#allocation3], 0  ;;  %s1390_s0 = inlined_call_operand.hbm [shape: f32[2,16,128], index: 0, kind: input, shape index: {}]   ;;  %s1391_s1 = inlined_call_operand.hbm [shape: bf16[128,256], index: 1, kind: input, shape index: {}]   ;;  %s1392_s2 = inlined_call_operand.vmem [shape: f32[1,256], index: 2, kind: input, shape index: {}]   ;;  %s1393_s3 = inlined_call_operand.vmem [shape: f32[1,128], index: 3, kind: input, shape index: {}]   ;;  %s1394_s4 = inlined_call_operand.hbm [shape: f32[1,128], index: 4, kind: input, shape index: {}]   ;;  %s1395_s5 = inlined_call_operand.hbm [shape: bf16[128,256], index: 5, kind: input, shape index: {}]   ;;  %s1396_s6 = inlined_call_operand.vmem [shape: f32[1,256], index: 6, kind: input, shape index: {}]   ;;  %s1397_s7 = inlined_call_operand.vmem [shape: f32[1,128], index: 7, kind: input, shape index: {}]   ;;  %s1398_s8 = inlined_call_operand.vmem [shape: f32[1,128], index: 8, kind: input, shape index: {}]   ;;  %s1399_s9 = inlined_call_operand.hbm [shape: bf16[128,256], index: 9, kind: input, shape index: {}]   ;;  %s1400_s10 = inlined_call_operand.vmem [shape: f32[1,256], index: 10, kind: input, shape index: {}]   ;;  %s1401_s11 = inlined_call_operand.vmem [shape: f32[1,128], index: 11, kind: input, shape index: {}]   ;;  %s1402_s12 = inlined_call_operand.vmem [shape: f32[1,128], index: 12, kind: input, shape index: {}]   ;;  %s1403_s13 = inlined_call_operand.hbm [shape: f32[2,16,128], index: 13, kind: output, shape index: {}]  }
   0x1   :  { %19 = vsyncpa [#allocation6], 0 }
   0x2   :  { %20 = vsyncpa [#allocation9], 0 }
   0x3   :  { %21 = vsyncpa [#allocation4], 0  ;;  %s1238_s25 = smov [#allocation5]   ;;  %s1239_s27 = smov [#allocation8]  }
   0x4   :  { %s39_s26 = sshll.u32 %s1238_s25, 4  ;;  %s65_s28 = sshll.u32 %s1239_s27, 4  ;;  %s40_s26 = int_to_ptr.vmem [resolvable:$true] %s39_s26  ;;  %s66_s28 = int_to_ptr.vmem [resolvable:$true] %s65_s28 }
   0x5   :  { %s1118_s29 = scalar_lea.vmem %s40_s26, 2048  ;;  %p1123_p1 = scmp.lt.s32.totalorder %s40_s26, %s40_s26 }
   0x6   :  { %p1119_p0 = scmp.ne.s32.totalorder %s40_s26, %s1118_s29  ;;  %p1124_p2 = scmp.lt.s32.totalorder %s1118_s29, %s1118_s29 }
   0x8   :  { %p1125_p3 = por %p1124_p2, %p1123_p1 }
   0xa   :  { %p1126_p4 = pnand %p1125_p3, %p1119_p0 }
   0xc   :  { %1129 = shalt.err (!%p1126_p4)
}
   0xd   :  { %s1240_s30 = smov 128   ;;  %s1241_s14 = smov 8  }
   0xe   :  { %45 = dma.hbm_to_vmem [thread:$0]  %s1391_s1, 2048, %s40_s26, [#allocation6], %s1240_s30, %s1240_s30, %s1241_s14  }
   0xf   :  { %s1138_s17 = scalar_lea.vmem %s66_s28, 2048  ;;  %p1143_p6 = scmp.lt.s32.totalorder %s66_s28, %s66_s28 }
  0x10   :  { %p1139_p5 = scmp.ne.s32.totalorder %s66_s28, %s1138_s17  ;;  %p1144_p7 = scmp.lt.s32.totalorder %s1138_s17, %s1138_s17 }
  0x12   :  { %p1145_p8 = por %p1144_p7, %p1143_p6 }
  0x14   :  { %p1146_p9 = pnand %p1145_p8, %p1139_p5 }
  0x16   :  { %1149 = shalt.err (!%p1146_p9)
}
  0x17   :  { %71 = dma.hbm_to_vmem [thread:$0]  %s1395_s5, 2048, %s66_s28, [#allocation9], %s1240_s30, %s1240_s30, %s1241_s14  }
  0x18   :  { %s1242_s20 = smov [#allocation2]   ;;  %s1243_s22 = smov [#allocation7]  }
  0x19   :  { %s27_s21 = sshll.u32 %s1242_s20, 4  ;;  %s56_s23 = sshll.u32 %s1243_s22, 4  ;;  %s28_s21 = int_to_ptr.vmem [resolvable:$true] %s27_s21  ;;  %s57_s23 = int_to_ptr.vmem [resolvable:$true] %s56_s23 }
  0x1a   :  { %s1158_s1 = scalar_lea.vmem %s28_s21, 512  ;;  %p1163_p11 = scmp.lt.s32.totalorder %s28_s21, %s28_s21 }
  0x1b   :  { %p1159_p10 = scmp.ne.s32.totalorder %s28_s21, %s1158_s1  ;;  %p1164_p12 = scmp.lt.s32.totalorder %s1158_s1, %s1158_s1 }
  0x1d   :  { %p1165_p13 = por %p1164_p12, %p1163_p11 }
  0x1f   :  { %p1166_p0 = pnand %p1165_p13, %p1159_p10 }
  0x21   :  { %1169 = shalt.err (!%p1166_p0)
}
  0x22   :  { %33 = dma.hbm_to_vmem [thread:$0]  %s1390_s0, 512, %s28_s21, [#allocation3], %s1240_s30, %s1240_s30, %s1241_s14  }
  0x23   :  { %s1178_s5 = scalar_lea.vmem %s57_s23, 16  ;;  %s1182_s26 = scalar_lea.vmem %s57_s23, 32 }
  0x24   :  { %p1179_p1 = scmp.ne.s32.totalorder %s57_s23, %s1178_s5  ;;  %p1183_p2 = scmp.lt.s32.totalorder %s57_s23, %s57_s23 }
  0x25   :  { %p1184_p3 = scmp.lt.s32.totalorder %s1182_s26, %s1178_s5 }
  0x27   :  { %p1185_p4 = por %p1184_p3, %p1183_p2 }
  0x29   :  { %p1186_p5 = pnand %p1185_p4, %p1179_p1 }
  0x2b   :  { %1189 = shalt.err (!%p1186_p5)
}
  0x2c   :  { %59 = dma.hbm_to_vmem [thread:$0]  %s1394_s4, 16, %s57_s23, [#allocation6]  }
  0x2d   :  { %s1244_s29 = smov [#allocation10]  }
  0x2e   :  { %s83_s15 = sshll.u32 %s1244_s29, 4  ;;  %s84_s15 = int_to_ptr.vmem [resolvable:$true] %s83_s15 }
  0x2f   :  { %s1198_s16 = scalar_lea.vmem %s84_s15, 2048  ;;  %p1203_p7 = scmp.lt.s32.totalorder %s84_s15, %s84_s15 }
  0x30   :  { %p1199_p6 = scmp.ne.s32.totalorder %s84_s15, %s1198_s16  ;;  %p1204_p8 = scmp.lt.s32.totalorder %s1198_s16, %s1198_s16 }
  0x32   :  { %p1205_p9 = por %p1204_p8, %p1203_p7 }
  0x34   :  { %p1206_p10 = pnand %p1205_p9, %p1199_p6 }
  0x36   :  { %1209 = shalt.err (!%p1206_p10)
}
  0x37   :  { %89 = dma.hbm_to_vmem [thread:$0]  %s1399_s9, 2048, %s84_s15, [#allocation9], %s1240_s30, %s1240_s30, %s1241_s14  }
  0x38   :  { %1230 = dma.done.wait [#allocation3], 512  }
  0x39   :  { %1231 = vsyncadd [#allocation3], 4294966784 }
  0x3a   :  { %1232 = dma.done.wait [#allocation6], 2064  }
  0x3b   :  { %1233 = vsyncadd [#allocation6], 4294965232 }
  0x3c   :  { %1234 = dma.done.wait [#allocation9], 4096  }
  0x3d   :  { %1235 = vsyncadd [#allocation9], 4294963200  ;;  %v1245_v0 = vmov 0   ;;  %v984_v1 = vld [vmem:[#allocation5 + $0x74] ss:$8 sps:$4 sm:$0xff]   ;;  %v112_v17 = vld [vmem:[#allocation2] sm:$0xff]  ;;  %v136_v39 = vlaneseq }
  0x3e   :  { %258 = vmatprep.mubr.bf16.mxu0 %v1245_v0  ;;  %510 = vmatprep.mubr.bf16.mxu1 %v1245_v0  ;;  %v986_v2 = vld [vmem:[#allocation5 + $0x70] ss:$8 sps:$4 sm:$0xff]   ;;  %v987_v3 = vld [vmem:[#allocation5 + $0x64] ss:$8 sps:$4 sm:$0xff]   ;;  %v989_v4 = vld [vmem:[#allocation5 + $0x60] ss:$8 sps:$4 sm:$0xff]  }
  0x3f   :  { %226 = vmatprep.subr.bf16.mxu0 %v984_v1  ;;  %v990_v5 = vld [vmem:[#allocation5 + $0x54] ss:$8 sps:$4 sm:$0xff]   ;;  %v992_v6 = vld [vmem:[#allocation5 + $0x50] ss:$8 sps:$4 sm:$0xff]   ;;  %v993_v7 = vld [vmem:[#allocation5 + $0x44] ss:$8 sps:$4 sm:$0xff]  }
  0x40   :  { %227 = vmatpush1.bf16.msra.mxu0 %v986_v2  ;;  %v995_v8 = vld [vmem:[#allocation5 + $0x40] ss:$8 sps:$4 sm:$0xff]   ;;  %v996_v9 = vld [vmem:[#allocation5 + $0x34] ss:$8 sps:$4 sm:$0xff]   ;;  %v998_v10 = vld [vmem:[#allocation5 + $0x30] ss:$8 sps:$4 sm:$0xff]  }
  0x41   :  { %228 = vmatprep.subr.bf16.mxu0 %v987_v3  ;;  %v999_v11 = vld [vmem:[#allocation5 + $0x24] ss:$8 sps:$4 sm:$0xff]   ;;  %v1001_v12 = vld [vmem:[#allocation5 + $0x20] ss:$8 sps:$4 sm:$0xff]   ;;  %v1002_v13 = vld [vmem:[#allocation5 + $0x14] ss:$8 sps:$4 sm:$0xff]  }
  0x42   :  { %v1004_v14 = vld [vmem:[#allocation5 + $0x10] ss:$8 sps:$4 sm:$0xff]   ;;  %v1005_v15 = vld [vmem:[#allocation5 + $0x4] ss:$8 sps:$4 sm:$0xff]   ;;  %v1007_v16 = vld [vmem:[#allocation5] ss:$8 sps:$4 sm:$0xff]  }
  0x43   :  { %v113_v18 = vld [vmem:[#allocation2 + $0x8] sm:$0xff]  ;;  %v114_v20 = vld [vmem:[#allocation2 + $0x10] sm:$0xff]  ;;  %v115_v21 = vld [vmem:[#allocation2 + $0x18] sm:$0xff]  ;;  %v137_v40 = vshrl.u32 %v136_v39, 7  ;;  %s1246_s25 = smov [#allocation11]  }
  0x44   :  { %229 = vmatpush1.bf16.msra.mxu0 %v989_v4  ;;  %v116_v19 = vpack.c.bf16 %v113_v18, %v112_v17  ;;  %v117_v22 = vpack.c.bf16 %v115_v21, %v114_v20  ;;  %v1008_v23 = vld [vmem:[#allocation8 + $0x74] ss:$8 sps:$4 sm:$0xff]   ;;  %v1010_v24 = vld [vmem:[#allocation8 + $0x70] ss:$8 sps:$4 sm:$0xff]   ;;  %v1011_v25 = vld [vmem:[#allocation8 + $0x64] ss:$8 sps:$4 sm:$0xff]  }
  0x45   :  { %230 = vmatprep.subr.bf16.mxu0 %v990_v5  ;;  %478 = vmatprep.subr.bf16.mxu1 %v1008_v23  ;;  %v1013_v26 = vld [vmem:[#allocation8 + $0x60] ss:$8 sps:$4 sm:$0xff]   ;;  %v1014_v27 = vld [vmem:[#allocation8 + $0x54] ss:$8 sps:$4 sm:$0xff]   ;;  %v1016_v28 = vld [vmem:[#allocation8 + $0x50] ss:$8 sps:$4 sm:$0xff]  }
  0x46   :  { %479 = vmatpush1.bf16.msra.mxu1 %v1010_v24  ;;  %v1017_v29 = vld [vmem:[#allocation8 + $0x44] ss:$8 sps:$4 sm:$0xff]   ;;  %v1019_v30 = vld [vmem:[#allocation8 + $0x40] ss:$8 sps:$4 sm:$0xff]   ;;  %v1020_v31 = vld [vmem:[#allocation8 + $0x34] ss:$8 sps:$4 sm:$0xff]  }
  0x47   :  { %480 = vmatprep.subr.bf16.mxu1 %v1011_v25  ;;  %v1022_v32 = vld [vmem:[#allocation8 + $0x30] ss:$8 sps:$4 sm:$0xff]   ;;  %v1023_v33 = vld [vmem:[#allocation8 + $0x24] ss:$8 sps:$4 sm:$0xff]   ;;  %v1025_v34 = vld [vmem:[#allocation8 + $0x20] ss:$8 sps:$4 sm:$0xff]  }
  0x48   :  { %231 = vmatpush1.bf16.msra.mxu0 %v992_v6  ;;  %v1026_v35 = vld [vmem:[#allocation8 + $0x14] ss:$8 sps:$4 sm:$0xff]   ;;  %v1028_v36 = vld [vmem:[#allocation8 + $0x10] ss:$8 sps:$4 sm:$0xff]   ;;  %v1029_v37 = vld [vmem:[#allocation8 + $0x4] ss:$8 sps:$4 sm:$0xff]  }
  0x49   :  { %232 = vmatprep.subr.bf16.mxu0 %v993_v7  ;;  %v1031_v38 = vld [vmem:[#allocation8] ss:$8 sps:$4 sm:$0xff]   ;;  %v1348_v41 = vsub.s32 1, %v137_v40  ;;  %v134_v42 = vld [vmem:[%s1392_s2] sm:$0x3]  ;;  %v1354_v4 = vsub.s32 0, %v137_v40 }
  0x4a   :  { %481 = vmatpush1.bf16.msra.mxu1 %v1013_v26  ;;  %s879_s5 = sshll.u32 %s1246_s25, 4  ;;  %s880_s5 = int_to_ptr.vmem [resolvable:$true] %s879_s5 }
  0x4b   :  { %482 = vmatprep.subr.bf16.mxu1 %v1014_v27  ;;  %v143_v43 = vrot.slane %v134_v42, %v1348_v41  ;;  %v139_v6 = vrot.slane %v134_v42, %v1354_v4  ;;  %p1215_p12 = scmp.lt.s32.totalorder %s880_s5, %s880_s5 }
  0x4c   :  { %233 = vmatpush1.bf16.msra.mxu0 %v995_v8 }
  0x4d   :  { %234 = vmatprep.subr.bf16.mxu0 %v996_v9 }
  0x4e   :  { %483 = vmatpush1.bf16.msra.mxu1 %v1016_v28 }
  0x4f   :  { %484 = vmatprep.subr.bf16.mxu1 %v1017_v29 }
  0x50   :  { %235 = vmatpush1.bf16.msra.mxu0 %v998_v10 }
  0x51   :  { %236 = vmatprep.subr.bf16.mxu0 %v999_v11 }
  0x52   :  { %485 = vmatpush1.bf16.msra.mxu1 %v1019_v30 }
  0x53   :  { %486 = vmatprep.subr.bf16.mxu1 %v1020_v31 }
  0x54   :  { %237 = vmatpush1.bf16.msra.mxu0 %v1001_v12 }
  0x55   :  { %238 = vmatprep.subr.bf16.mxu0 %v1002_v13 }
  0x56   :  { %487 = vmatpush1.bf16.msra.mxu1 %v1022_v32 }
  0x57   :  { %488 = vmatprep.subr.bf16.mxu1 %v1023_v33 }
  0x58   :  { %239 = vmatpush1.bf16.msra.mxu0 %v1004_v14 }
  0x59   :  { %240 = vmatprep.subr.bf16.mxu0 %v1005_v15 }
  0x5a   :  { %489 = vmatpush1.bf16.msra.mxu1 %v1025_v34 }
  0x5b   :  { %490 = vmatprep.subr.bf16.mxu1 %v1026_v35 }
  0x5c   :  { %241 = vmatpush1.bf16.msra.mxu0 %v1007_v16 }
  0x5e   :  { %491 = vmatpush1.bf16.msra.mxu1 %v1028_v36 }
  0x5f   :  { %259 = vmatmul.mubr.bf16.vlgmr.msra.gmra.mxu0 %v116_v19  ;;  %492 = vmatprep.subr.bf16.mxu1 %v1029_v37 }
  0x60   :  { %268 = vmatprep.mubr.bf16.mxu0 %v1245_v0 }
  0x62   :  { %493 = vmatpush1.bf16.msra.mxu1 %v1031_v38 }
  0x67   :  { %269 = vmatmul.mubr.bf16.gmra.mxu0 %v117_v22 }
  0x68   :  { %761 = vmatprep.mubr.bf16.mxu0 %v1245_v0 }
 0x11f   :  { %v260_v44 = vpop.f32.mrf.mxu0 }
 0x120   :  { %v261_v10 = vadd.f32 %v260_v44, %v139_v6 }
 0x121   :  { %v262_v45 = vpop.f32.mrf.mxu0 }
 0x122   :  { %v263_v46 = vadd.f32 %v262_v45, %v143_v43 }
 0x123   :  { %v264_v47 = vpop.f32.mrf.mxu0 }
 0x124   :  { %v909_v48 = vmul.f32 -1.442695, %v263_v46  ;;  %v265_v8 = vadd.f32 %v264_v47, %v139_v6 }
 0x125   :  { %v266_v49 = vpop.f32.mrf.mxu0 }
 0x126   :  { %1056 = vpow2.f32 %v909_v48  ;;  %v267_v50 = vadd.f32 %v266_v49, %v143_v43 }
 0x127   :  { %v270_v51 = vpop.f32.mrf.mxu0 }
 0x128   :  { %v910_v52 = vmul.f32 -1.442695, %v267_v50  ;;  %v271_v12 = vadd.f32 %v270_v51, %v139_v6 }
 0x129   :  { %v272_v53 = vpop.f32.mrf.mxu0 }
 0x12a   :  { %1058 = vpow2.f32 %v910_v52  ;;  %v273_v54 = vadd.f32 %v272_v53, %v143_v43 }
 0x12b   :  { %v274_v55 = vpop.f32.mrf.mxu0 }
 0x12c   :  { %v911_v56 = vmul.f32 -1.442695, %v273_v54  ;;  %v275_v17 = vadd.f32 %v274_v55, %v139_v6  ;;  %v913_v54 = vld [vmem:[%s1393_s3] ss:$0 sm:$0xff] }
 0x12d   :  { %v276_v57 = vpop.f32.mrf.mxu0 }
 0x12e   :  { %1060 = vpow2.f32 %v911_v56  ;;  %v277_v58 = vadd.f32 %v276_v57, %v143_v43  ;;  %v914_v57 = vld [vmem:[#allocation7] ss:$0 sm:$0xff] }
 0x130   :  { %v912_v59 = vmul.f32 -1.442695, %v277_v58 }
 0x132   :  { %1062 = vpow2.f32 %v912_v59 }
 0x133   :  { %v1057_v60 = vpop.eup %1056 }
 0x134   :  { %v291_v61 = vadd.f32 1.0, %v1057_v60 }
 0x136   :  { %1064 = vrcp.f32 %v291_v61 }
 0x137   :  { %v1059_v62 = vpop.eup %1058 }
 0x138   :  { %v292_v63 = vadd.f32 1.0, %v1059_v62 }
 0x13a   :  { %1066 = vrcp.f32 %v292_v63 }
 0x13b   :  { %v1061_v1 = vpop.eup %1060 }
 0x13c   :  { %v293_v2 = vadd.f32 1.0, %v1061_v1 }
 0x13e   :  { %1068 = vrcp.f32 %v293_v2 }
 0x13f   :  { %v1063_v3 = vpop.eup %1062 }
 0x140   :  { %v294_v5 = vadd.f32 1.0, %v1063_v3 }
 0x142   :  { %1070 = vrcp.f32 %v294_v5 }
 0x143   :  { %v1065_v7 = vpop.eup %1064 }
 0x144   :  { %v303_v13 = vmul.f32 %v1065_v7, %v261_v10  ;;  %v1037_v10 = vld [vmem:[#allocation10 + $0x64] ss:$8 sps:$4 sm:$0xff]  }
 0x146   :  { %v307_v18 = vmax.f32 %v303_v13, 0.0  ;;  %v1038_v13 = vld [vmem:[#allocation10 + $0x50] ss:$8 sps:$4 sm:$0xff]  }
 0x147   :  { %v1067_v9 = vpop.eup %1066 }
 0x148   :  { %v304_v11 = vmul.f32 %v1067_v9, %v265_v8  ;;  %v1032_v8 = vld [vmem:[#allocation10 + $0x70] ss:$8 sps:$4 sm:$0xff]   ;;  %v1034_v9 = vld [vmem:[#allocation10 + $0x74] ss:$8 sps:$4 sm:$0xff]  }
 0x149   :  { %729 = vmatprep.subr.bf16.mxu0 %v1034_v9  ;;  %959 = vmatprep.subr.bf16.mxu1 %v1034_v9 }
 0x14a   :  { %v308_v16 = vmax.f32 %v304_v11, 0.0  ;;  %730 = vmatpush1.bf16.msra.mxu0 %v1032_v8  ;;  %v1035_v11 = vld [vmem:[#allocation10 + $0x60] ss:$8 sps:$4 sm:$0xff]  }
 0x14b   :  { %v1069_v14 = vpop.eup %1068  ;;  %731 = vmatprep.subr.bf16.mxu0 %v1037_v10 }
 0x14c   :  { %v305_v15 = vmul.f32 %v1069_v14, %v271_v12  ;;  %v311_v22 = vadd.f32 %v308_v16, %v307_v18  ;;  %v1040_v12 = vld [vmem:[#allocation10 + $0x54] ss:$8 sps:$4 sm:$0xff]   ;;  %v1043_v14 = vld [vmem:[#allocation10 + $0x44] ss:$8 sps:$4 sm:$0xff]  }
 0x14e   :  { %v309_v19 = vmax.f32 %v305_v15, 0.0  ;;  %732 = vmatpush1.bf16.msra.mxu0 %v1035_v11  ;;  %v1046_v15 = vld [vmem:[#allocation10 + $0x34] ss:$8 sps:$4 sm:$0xff]  }
 0x14f   :  { %v1071_v20 = vpop.eup %1070  ;;  %733 = vmatprep.subr.bf16.mxu0 %v1040_v12 }
 0x150   :  { %v306_v21 = vmul.f32 %v1071_v20, %v275_v17  ;;  %v312_v24 = vadd.f32 %v311_v22, %v309_v19  ;;  %v1049_v17 = vld [vmem:[#allocation10 + $0x24] ss:$8 sps:$4 sm:$0xff]   ;;  %v1050_v20 = vld [vmem:[#allocation10 + $0x10] ss:$8 sps:$4 sm:$0xff]   ;;  %v1053_v22 = vld [vmem:[#allocation10] ss:$8 sps:$4 sm:$0xff]  }
 0x152   :  { %v310_v23 = vmax.f32 %v306_v21, 0.0  ;;  %734 = vmatpush1.bf16.msra.mxu0 %v1038_v13  ;;  %v1055_v21 = vld [vmem:[#allocation10 + $0x4] ss:$8 sps:$4 sm:$0xff]  }
 0x153   :  { %735 = vmatprep.subr.bf16.mxu0 %v1043_v14 }
 0x154   :  { %v313_v25 = vadd.f32 %v312_v24, %v310_v23 }
 0x156   :  { %v314_v26 = vrot.slane %v313_v25, 4 }
 0x158   :  { %v315_v27 = vadd.f32 %v314_v26, %v313_v25 }
 0x15a   :  { %v316_v28 = vrot.slane %v315_v27, 2 }
 0x15c   :  { %v317_v29 = vadd.f32 %v316_v28, %v315_v27 }
 0x15e   :  { %v318_v30 = vrot.slane %v317_v29, 1 }
 0x160   :  { %v319_v31 = vadd.f32 %v318_v30, %v317_v29 }
 0x162   :  { %v321_v32 = vmul.f32 0.03125, %v319_v31 }
 0x164   :  { %v322_v33 = vsub.f32 %v307_v18, %v321_v32  ;;  %v323_v34 = vsub.f32 %v308_v16, %v321_v32  ;;  %v324_v35 = vsub.f32 %v309_v19, %v321_v32  ;;  %v325_v36 = vsub.f32 %v310_v23, %v321_v32  ;;  %v1044_v16 = vld [vmem:[#allocation10 + $0x30] ss:$8 sps:$4 sm:$0xff]   ;;  %v1047_v18 = vld [vmem:[#allocation10 + $0x20] ss:$8 sps:$4 sm:$0xff]   ;;  %v1052_v19 = vld [vmem:[#allocation10 + $0x14] ss:$8 sps:$4 sm:$0xff]  }
 0x165   :  { %v386_v23 = vld [vmem:[%s1396_s6] sm:$0x3] }
 0x166   :  { %v326_v37 = vmul.f32 %v322_v33, %v322_v33  ;;  %v327_v38 = vmul.f32 %v323_v34, %v323_v34  ;;  %v328_v39 = vmul.f32 %v324_v35, %v324_v35  ;;  %v329_v42 = vmul.f32 %v325_v36, %v325_v36 }
 0x167   :  { %v395_v24 = vrot.slane %v386_v23, %v1348_v41 }
 0x168   :  { %v330_v40 = vadd.f32 %v327_v38, %v326_v37 }
 0x16a   :  { %v331_v43 = vadd.f32 %v330_v40, %v328_v39 }
 0x16c   :  { %v332_v44 = vadd.f32 %v331_v43, %v329_v42 }
 0x16e   :  { %v333_v45 = vrot.slane %v332_v44, 4 }
 0x170   :  { %v334_v46 = vadd.f32 %v333_v45, %v332_v44 }
 0x172   :  { %v335_v47 = vrot.slane %v334_v46, 2 }
 0x174   :  { %v336_v48 = vadd.f32 %v335_v47, %v334_v46 }
 0x176   :  { %v337_v49 = vrot.slane %v336_v48, 1 }
 0x178   :  { %v338_v50 = vadd.f32 %v337_v49, %v336_v48 }
 0x17a   :  { %v339_v51 = vmul.f32 0.03125, %v338_v50  ;;  %v391_v50 = vrot.slane %v386_v23, %v1354_v4 }
 0x17c   :  { %v340_v52 = vadd.f32 1e-05, %v339_v51 }
 0x17e   :  { %1072 = vrsqrt.f32 %v340_v52 }
 0x18b   :  { %v1073_v53 = vpop.eup %1072 }
 0x18c   :  { %v342_v55 = vmul.f32 %v1073_v53, %v322_v33  ;;  %v343_v56 = vmul.f32 %v1073_v53, %v323_v34  ;;  %v344_v60 = vmul.f32 %v1073_v53, %v324_v35  ;;  %v345_v61 = vmul.f32 %v1073_v53, %v325_v36 }
 0x18e   :  { %v353_v58 = vmul.f32 %v913_v54, %v342_v55  ;;  %v354_v59 = vmul.f32 %v913_v54, %v343_v56  ;;  %v355_v2 = vmul.f32 %v913_v54, %v344_v60  ;;  %v356_v3 = vmul.f32 %v913_v54, %v345_v61 }
 0x190   :  { %v364_v62 = vadd.f32 %v914_v57, %v353_v58  ;;  %v365_v63 = vadd.f32 %v914_v57, %v354_v59  ;;  %v366_v5 = vadd.f32 %v914_v57, %v355_v2  ;;  %v367_v6 = vadd.f32 %v914_v57, %v356_v3 }
 0x192   :  { %v368_v1 = vpack.c.bf16 %v365_v63, %v364_v62  ;;  %v369_v7 = vpack.c.bf16 %v367_v6, %v366_v5 }
 0x194   :  { %511 = vmatmul.mubr.bf16.vlgmr.msra.gmra.mxu1 %v368_v1 }
 0x195   :  { %520 = vmatprep.mubr.bf16.mxu1 %v1245_v0  ;;  %967 = vmatpush1.bf16.msra.mxu1 %v1032_v8 }
 0x196   :  { %960 = vmatprep.subr.bf16.mxu1 %v1037_v10 }
 0x199   :  { %968 = vmatpush1.bf16.msra.mxu1 %v1035_v11 }
 0x19a   :  { %961 = vmatprep.subr.bf16.mxu1 %v1040_v12 }
 0x19c   :  { %521 = vmatmul.mubr.bf16.gmra.mxu1 %v369_v7 }
 0x19d   :  { %771 = vmatprep.mubr.bf16.mxu1 %v1245_v0  ;;  %969 = vmatpush1.bf16.msra.mxu1 %v1038_v13  ;;  %v1041_v0 = vld [vmem:[#allocation10 + $0x40] ss:$8 sps:$4 sm:$0xff]  }
 0x19e   :  { %962 = vmatprep.subr.bf16.mxu1 %v1043_v14  ;;  %736 = vmatpush1.bf16.msra.mxu0 %v1041_v0 }
 0x19f   :  { %737 = vmatprep.subr.bf16.mxu0 %v1046_v15 }
 0x1a1   :  { %970 = vmatpush1.bf16.msra.mxu1 %v1041_v0 }
 0x1a2   :  { %963 = vmatprep.subr.bf16.mxu1 %v1046_v15  ;;  %738 = vmatpush1.bf16.msra.mxu0 %v1044_v16 }
 0x1a3   :  { %739 = vmatprep.subr.bf16.mxu0 %v1049_v17 }
 0x1a5   :  { %971 = vmatpush1.bf16.msra.mxu1 %v1044_v16 }
 0x1a6   :  { %964 = vmatprep.subr.bf16.mxu1 %v1049_v17  ;;  %740 = vmatpush1.bf16.msra.mxu0 %v1047_v18 }
 0x1a7   :  { %741 = vmatprep.subr.bf16.mxu0 %v1052_v19 }
 0x1a9   :  { %972 = vmatpush1.bf16.msra.mxu1 %v1047_v18 }
 0x1aa   :  { %965 = vmatprep.subr.bf16.mxu1 %v1052_v19  ;;  %742 = vmatpush1.bf16.msra.mxu0 %v1050_v20 }
 0x1ab   :  { %743 = vmatprep.subr.bf16.mxu0 %v1055_v21 }
 0x1ad   :  { %973 = vmatpush1.bf16.msra.mxu1 %v1050_v20 }
 0x1ae   :  { %966 = vmatprep.subr.bf16.mxu1 %v1055_v21  ;;  %744 = vmatpush1.bf16.msra.mxu0 %v1053_v22 }
 0x1b1   :  { %974 = vmatpush1.bf16.msra.mxu1 %v1053_v22 }
 0x254   :  { %v512_v25 = vpop.f32.mrf.mxu1 }
 0x255   :  { %v513_v54 = vadd.f32 %v512_v25, %v391_v50 }
 0x256   :  { %v514_v26 = vpop.f32.mrf.mxu1 }
 0x257   :  { %v515_v27 = vadd.f32 %v514_v26, %v395_v24 }
 0x258   :  { %v516_v28 = vpop.f32.mrf.mxu1 }
 0x259   :  { %v931_v29 = vmul.f32 -1.442695, %v515_v27  ;;  %v517_v52 = vadd.f32 %v516_v28, %v391_v50 }
 0x25a   :  { %v518_v30 = vpop.f32.mrf.mxu1 }
 0x25b   :  { %1074 = vpow2.f32 %v931_v29  ;;  %v519_v31 = vadd.f32 %v518_v30, %v395_v24 }
 0x25c   :  { %v522_v32 = vpop.f32.mrf.mxu1 }
 0x25d   :  { %v932_v33 = vmul.f32 -1.442695, %v519_v31  ;;  %v523_v57 = vadd.f32 %v522_v32, %v391_v50 }
 0x25e   :  { %v524_v34 = vpop.f32.mrf.mxu1 }
 0x25f   :  { %1076 = vpow2.f32 %v932_v33  ;;  %v525_v35 = vadd.f32 %v524_v34, %v395_v24  ;;  %v935_v34 = vld [vmem:[%s1397_s7] ss:$0 sm:$0xff] }
 0x260   :  { %v526_v36 = vpop.f32.mrf.mxu1 }
 0x261   :  { %v933_v37 = vmul.f32 -1.442695, %v525_v35  ;;  %v527_v63 = vadd.f32 %v526_v36, %v391_v50 }
 0x262   :  { %v528_v38 = vpop.f32.mrf.mxu1 }
 0x263   :  { %1078 = vpow2.f32 %v933_v37  ;;  %v529_v39 = vadd.f32 %v528_v38, %v395_v24 }
 0x265   :  { %v934_v40 = vmul.f32 -1.442695, %v529_v39  ;;  %v936_v39 = vld [vmem:[%s1398_s8] ss:$0 sm:$0xff] }
 0x267   :  { %1080 = vpow2.f32 %v934_v40 }
 0x268   :  { %v1075_v42 = vpop.eup %1074 }
 0x269   :  { %v543_v43 = vadd.f32 1.0, %v1075_v42 }
 0x26b   :  { %1082 = vrcp.f32 %v543_v43 }
 0x26c   :  { %v1077_v44 = vpop.eup %1076 }
 0x26d   :  { %v544_v45 = vadd.f32 1.0, %v1077_v44 }
 0x26f   :  { %1084 = vrcp.f32 %v544_v45 }
 0x270   :  { %v1079_v46 = vpop.eup %1078 }
 0x271   :  { %v545_v47 = vadd.f32 1.0, %v1079_v46 }
 0x273   :  { %1086 = vrcp.f32 %v545_v47 }
 0x274   :  { %v1081_v48 = vpop.eup %1080 }
 0x275   :  { %v546_v49 = vadd.f32 1.0, %v1081_v48 }
 0x277   :  { %1088 = vrcp.f32 %v546_v49 }
 0x278   :  { %v1083_v51 = vpop.eup %1082 }
 0x279   :  { %v555_v56 = vmul.f32 %v1083_v51, %v513_v54  ;;  %v637_v51 = vld [vmem:[%s1400_s10] sm:$0x3] }
 0x27b   :  { %v559_v61 = vmax.f32 %v555_v56, 0.0 }
 0x27c   :  { %v1085_v53 = vpop.eup %1084 }
 0x27d   :  { %v556_v55 = vmul.f32 %v1085_v53, %v517_v52  ;;  %v646_v52 = vrot.slane %v637_v51, %v1348_v41 }
 0x27f   :  { %v560_v59 = vmax.f32 %v556_v55, 0.0 }
 0x280   :  { %v1087_v58 = vpop.eup %1086 }
 0x281   :  { %v557_v60 = vmul.f32 %v1087_v58, %v523_v57  ;;  %v563_v2 = vadd.f32 %v560_v59, %v559_v61 }
 0x283   :  { %v561_v62 = vmax.f32 %v557_v60, 0.0 }
 0x284   :  { %v1089_v1 = vpop.eup %1088 }
 0x285   :  { %v558_v3 = vmul.f32 %v1089_v1, %v527_v63  ;;  %v564_v5 = vadd.f32 %v563_v2, %v561_v62 }
 0x287   :  { %v562_v6 = vmax.f32 %v558_v3, 0.0 }
 0x289   :  { %v565_v7 = vadd.f32 %v564_v5, %v562_v6 }
 0x28b   :  { %v566_v8 = vrot.slane %v565_v7, 4 }
 0x28d   :  { %v567_v9 = vadd.f32 %v566_v8, %v565_v7 }
 0x28f   :  { %v568_v10 = vrot.slane %v567_v9, 2 }
 0x291   :  { %v569_v11 = vadd.f32 %v568_v10, %v567_v9 }
 0x293   :  { %v570_v12 = vrot.slane %v569_v11, 1 }
 0x295   :  { %v571_v13 = vadd.f32 %v570_v12, %v569_v11 }
 0x297   :  { %v572_v14 = vmul.f32 0.03125, %v571_v13 }
 0x299   :  { %v573_v0 = vsub.f32 %v559_v61, %v572_v14  ;;  %v574_v15 = vsub.f32 %v560_v59, %v572_v14  ;;  %v575_v16 = vsub.f32 %v561_v62, %v572_v14  ;;  %v576_v17 = vsub.f32 %v562_v6, %v572_v14 }
 0x29a   :  { %v642_v14 = vrot.slane %v637_v51, %v1354_v4 }
 0x29b   :  { %v577_v18 = vmul.f32 %v573_v0, %v573_v0  ;;  %v578_v19 = vmul.f32 %v574_v15, %v574_v15  ;;  %v579_v20 = vmul.f32 %v575_v16, %v575_v16  ;;  %v580_v22 = vmul.f32 %v576_v17, %v576_v17 }
 0x29d   :  { %v581_v21 = vadd.f32 %v578_v19, %v577_v18 }
 0x29f   :  { %v582_v23 = vadd.f32 %v581_v21, %v579_v20 }
 0x2a1   :  { %v583_v24 = vadd.f32 %v582_v23, %v580_v22 }
 0x2a3   :  { %v584_v25 = vrot.slane %v583_v24, 4 }
 0x2a5   :  { %v585_v26 = vadd.f32 %v584_v25, %v583_v24 }
 0x2a7   :  { %v586_v27 = vrot.slane %v585_v26, 2 }
 0x2a9   :  { %v587_v28 = vadd.f32 %v586_v27, %v585_v26 }
 0x2ab   :  { %v588_v29 = vrot.slane %v587_v28, 1 }
 0x2ad   :  { %v589_v30 = vadd.f32 %v588_v29, %v587_v28 }
 0x2af   :  { %v590_v31 = vmul.f32 0.03125, %v589_v30 }
 0x2b1   :  { %v591_v32 = vadd.f32 1e-05, %v590_v31 }
 0x2b3   :  { %1090 = vrsqrt.f32 %v591_v32 }
 0x2c0   :  { %v1091_v33 = vpop.eup %1090 }
 0x2c1   :  { %v593_v35 = vmul.f32 %v1091_v33, %v573_v0  ;;  %v594_v36 = vmul.f32 %v1091_v33, %v574_v15  ;;  %v595_v37 = vmul.f32 %v1091_v33, %v575_v16  ;;  %v596_v38 = vmul.f32 %v1091_v33, %v576_v17 }
 0x2c3   :  { %v604_v40 = vmul.f32 %v935_v34, %v593_v35  ;;  %v605_v42 = vmul.f32 %v935_v34, %v594_v36  ;;  %v606_v43 = vmul.f32 %v935_v34, %v595_v37  ;;  %v607_v44 = vmul.f32 %v935_v34, %v596_v38 }
 0x2c5   :  { %v615_v45 = vadd.f32 %v936_v39, %v604_v40  ;;  %v616_v46 = vadd.f32 %v936_v39, %v605_v42  ;;  %v617_v47 = vadd.f32 %v936_v39, %v606_v43  ;;  %v618_v48 = vadd.f32 %v936_v39, %v607_v44 }
 0x2c7   :  { %v619_v49 = vpack.c.bf16 %v616_v46, %v615_v45  ;;  %v620_v50 = vpack.c.bf16 %v618_v48, %v617_v47 }
 0x2c9   :  { %762 = vmatmul.mubr.bf16.vlgmr.msra.gmra.mxu0 %v619_v49  ;;  %772 = vmatmul.mubr.bf16.vlgmr.msra.gmra.mxu1 %v620_v50 }
 0x389   :  { %v763_v53 = vpop.f32.mrf.mxu0  ;;  %v773_v54 = vpop.f32.mrf.mxu1 }
 0x38a   :  { %v764_v15 = vadd.f32 %v763_v53, %v642_v14  ;;  %v774_v17 = vadd.f32 %v773_v54, %v642_v14 }
 0x38b   :  { %v765_v55 = vpop.f32.mrf.mxu0  ;;  %v775_v56 = vpop.f32.mrf.mxu1 }
 0x38c   :  { %v766_v57 = vadd.f32 %v765_v55, %v646_v52  ;;  %v776_v58 = vadd.f32 %v775_v56, %v646_v52 }
 0x38d   :  { %v767_v59 = vpop.f32.mrf.mxu0  ;;  %v777_v60 = vpop.f32.mrf.mxu1 }
 0x38e   :  { %v953_v61 = vmul.f32 -1.442695, %v766_v57  ;;  %v955_v62 = vmul.f32 -1.442695, %v776_v58  ;;  %v768_v18 = vadd.f32 %v767_v59, %v642_v14  ;;  %v778_v22 = vadd.f32 %v777_v60, %v642_v14  ;;  %v957_v60 = vld [vmem:[%s1401_s11] ss:$0 sm:$0xff] }
 0x38f   :  { %v769_v63 = vpop.f32.mrf.mxu0  ;;  %v779_v1 = vpop.f32.mrf.mxu1  ;;  %s1210_s11 = scalar_lea.vmem %s880_s5, 512 }
 0x390   :  { %1092 = vpow2.f32 %v953_v61  ;;  %v770_v2 = vadd.f32 %v769_v63, %v646_v52  ;;  %v780_v3 = vadd.f32 %v779_v1, %v646_v52  ;;  %p1211_p11 = scmp.ne.s32.totalorder %s880_s5, %s1210_s11  ;;  %p1216_p13 = scmp.lt.s32.totalorder %s1210_s11, %s1210_s11 }
 0x391   :  { %1094 = vpow2.f32 %v955_v62 }
 0x392   :  { %v954_v5 = vmul.f32 -1.442695, %v770_v2  ;;  %v956_v6 = vmul.f32 -1.442695, %v780_v3  ;;  %v958_v2 = vld [vmem:[%s1402_s12] ss:$0 sm:$0xff]  ;;  %p1217_p0 = por %p1216_p13, %p1215_p12 }
 0x394   :  { %1096 = vpow2.f32 %v954_v5  ;;  %p1218_p1 = pnand %p1217_p0, %p1211_p11 }
 0x395   :  { %1098 = vpow2.f32 %v956_v6 }
 0x39d   :  { %v1093_v41 = vpop.eup %1092 }
 0x39e   :  { %v1095_v7 = vpop.eup %1094  ;;  %v794_v8 = vadd.f32 1.0, %v1093_v41 }
 0x39f   :  { %v796_v9 = vadd.f32 1.0, %v1095_v7 }
 0x3a0   :  { %1100 = vrcp.f32 %v794_v8 }
 0x3a1   :  { %v1097_v10 = vpop.eup %1096  ;;  %1102 = vrcp.f32 %v796_v9 }
 0x3a2   :  { %v1099_v11 = vpop.eup %1098  ;;  %v795_v12 = vadd.f32 1.0, %v1097_v10 }
 0x3a3   :  { %v797_v13 = vadd.f32 1.0, %v1099_v11 }
 0x3a4   :  { %1104 = vrcp.f32 %v795_v12 }
 0x3a5   :  { %1106 = vrcp.f32 %v797_v13 }
 0x3ad   :  { %v1101_v0 = vpop.eup %1100 }
 0x3ae   :  { %v1103_v16 = vpop.eup %1102  ;;  %v806_v19 = vmul.f32 %v1101_v0, %v764_v15 }
 0x3af   :  { %v808_v24 = vmul.f32 %v1103_v16, %v774_v17 }
 0x3b0   :  { %v810_v26 = vmax.f32 %v806_v19, 0.0 }
 0x3b1   :  { %v1105_v20 = vpop.eup %1104  ;;  %v812_v28 = vmax.f32 %v808_v24, 0.0 }
 0x3b2   :  { %v1107_v21 = vpop.eup %1106  ;;  %v807_v23 = vmul.f32 %v1105_v20, %v768_v18 }
 0x3b3   :  { %v809_v25 = vmul.f32 %v1107_v21, %v778_v22 }
 0x3b4   :  { %v811_v27 = vmax.f32 %v807_v23, 0.0 }
 0x3b5   :  { %v813_v30 = vmax.f32 %v809_v25, 0.0 }
 0x3b6   :  { %v814_v29 = vadd.f32 %v811_v27, %v810_v26 }
 0x3b8   :  { %v815_v31 = vadd.f32 %v814_v29, %v812_v28 }
 0x3ba   :  { %v816_v32 = vadd.f32 %v815_v31, %v813_v30 }
 0x3bc   :  { %v817_v4 = vrot.slane %v816_v32, 4 }
 0x3be   :  { %v818_v33 = vadd.f32 %v817_v4, %v816_v32 }
 0x3c0   :  { %v819_v34 = vrot.slane %v818_v33, 2 }
 0x3c2   :  { %v820_v35 = vadd.f32 %v819_v34, %v818_v33 }
 0x3c4   :  { %v821_v36 = vrot.slane %v820_v35, 1 }
 0x3c6   :  { %v822_v37 = vadd.f32 %v821_v36, %v820_v35 }
 0x3c8   :  { %v823_v38 = vmul.f32 0.03125, %v822_v37 }
 0x3ca   :  { %v824_v39 = vsub.f32 %v810_v26, %v823_v38  ;;  %v825_v40 = vsub.f32 %v811_v27, %v823_v38  ;;  %v826_v42 = vsub.f32 %v812_v28, %v823_v38  ;;  %v827_v43 = vsub.f32 %v813_v30, %v823_v38 }
 0x3cc   :  { %v828_v44 = vmul.f32 %v824_v39, %v824_v39  ;;  %v829_v45 = vmul.f32 %v825_v40, %v825_v40  ;;  %v830_v46 = vmul.f32 %v826_v42, %v826_v42  ;;  %v831_v48 = vmul.f32 %v827_v43, %v827_v43 }
 0x3ce   :  { %v832_v47 = vadd.f32 %v829_v45, %v828_v44 }
 0x3d0   :  { %v833_v49 = vadd.f32 %v832_v47, %v830_v46 }
 0x3d2   :  { %v834_v50 = vadd.f32 %v833_v49, %v831_v48 }
 0x3d4   :  { %v835_v51 = vrot.slane %v834_v50, 4 }
 0x3d6   :  { %v836_v52 = vadd.f32 %v835_v51, %v834_v50 }
 0x3d8   :  { %v837_v53 = vrot.slane %v836_v52, 2 }
 0x3da   :  { %v838_v54 = vadd.f32 %v837_v53, %v836_v52 }
 0x3dc   :  { %v839_v55 = vrot.slane %v838_v54, 1 }
 0x3de   :  { %v840_v56 = vadd.f32 %v839_v55, %v838_v54 }
 0x3e0   :  { %v841_v57 = vmul.f32 0.03125, %v840_v56 }
 0x3e2   :  { %v842_v58 = vadd.f32 1e-05, %v841_v57 }
 0x3e4   :  { %1108 = vrsqrt.f32 %v842_v58 }
 0x3f1   :  { %v1109_v59 = vpop.eup %1108 }
 0x3f2   :  { %v844_v61 = vmul.f32 %v1109_v59, %v824_v39  ;;  %v845_v62 = vmul.f32 %v1109_v59, %v825_v40  ;;  %v846_v63 = vmul.f32 %v1109_v59, %v826_v42  ;;  %v847_v1 = vmul.f32 %v1109_v59, %v827_v43 }
 0x3f4   :  { %v855_v3 = vmul.f32 %v957_v60, %v844_v61  ;;  %v856_v5 = vmul.f32 %v957_v60, %v845_v62  ;;  %v857_v6 = vmul.f32 %v957_v60, %v846_v63  ;;  %v858_v41 = vmul.f32 %v957_v60, %v847_v1 }
 0x3f6   :  { %v866_v7 = vadd.f32 %v958_v2, %v855_v3  ;;  %v867_v8 = vadd.f32 %v958_v2, %v856_v5  ;;  %v868_v9 = vadd.f32 %v958_v2, %v857_v6  ;;  %v869_v10 = vadd.f32 %v958_v2, %v858_v41 }
 0x3f8   :  { %870 = vst [vmem:[#allocation11] sm:$0xff] %v866_v7  ;;  %871 = vst [vmem:[#allocation11 + $0x8] sm:$0xff] %v867_v8 }
 0x3f9   :  { %872 = vst [vmem:[#allocation11 + $0x10] sm:$0xff] %v868_v9  ;;  %873 = vst [vmem:[#allocation11 + $0x18] sm:$0xff] %v869_v10 }
 0x3fa   :  { %1221 = shalt.err (!%p1218_p1)
}
 0x3fb   :  { %885 = dma.vmem_to_hbm [thread:$0]  %s880_s5, 512, %s1403_s13, [#allocation4], %s1240_s30, %s1240_s30, %s1241_s14  }
 0x3fc   :  { %1236 = dma.done.wait [#allocation4], 512  }
 0x3fd   :  { %1237 = vsyncadd [#allocation4], 4294966784 }
 0x3fe   :  { %889 = vsyncpa [#allocation3], 1 }
 0x3ff   :  { %890 = vsyncpa [#allocation6], 1 }
 0x400   :  { %891 = vsyncpa [#allocation9], 1 }
 0x401   :  { %892 = vsyncpa [#allocation4], 1 }

</bundles_post_ra>
